<compile_context>
chip_gen: v7x
topology: tpu7x:2x2x1
jax: 0.10.0
libtpu: 0.0.40
codegen_flags: <defaults>
</compile_context>

<pallas_src>
import functools

import jax
import jax.numpy as jnp
from jax.experimental import pallas as pl
from jax.experimental.pallas import tpu as pltpu


def _round_up(x, m):
    return (x + m - 1) // m * m


def _conv_stats_kernel(at_ref, bt_ref, gb_ref, conv_ref, ss_ref, *, eps, inv_m):
    # at_ref:   [Kp, tile_s]    transposed im2col patches for this (sample, tile)
    # bt_ref:   [Cout, Kp]      reshaped conv weight (K zero-padded to Kp)
    # gb_ref:   [Cout, 2]       col 0 = gamma, col 1 = beta
    # conv_ref: [Cout, tile_s]  raw conv output (stored for pass 2)
    # ss_ref:   [Cout, 2]       resident accumulator: col0 = sum, col1 = sumsq;
    #                           overwritten with (scale, shift) on the last step.
    n = pl.program_id(0)
    t = pl.program_id(1)
    first = (n == 0) & (t == 0)
    last = ((n == pl.num_programs(0) - 1) & (t == pl.num_programs(1) - 1))

    @pl.when(first)
    def _init():
        ss_ref[...] = jnp.zeros_like(ss_ref)

    conv = jnp.dot(bt_ref[...], at_ref[...], preferred_element_type=jnp.float32)
    conv_ref[...] = conv
    ss_ref[:, 0:1] = ss_ref[:, 0:1] + jnp.sum(conv, axis=1, keepdims=True)
    ss_ref[:, 1:2] = ss_ref[:, 1:2] + jnp.sum(conv * conv, axis=1, keepdims=True)

    @pl.when(last)
    def _finalize():
        mean = ss_ref[:, 0:1] * inv_m
        var = jnp.maximum(ss_ref[:, 1:2] * inv_m - mean * mean, 0.0)
        scale = jax.lax.rsqrt(var + eps) * gb_ref[:, 0:1]
        shift = gb_ref[:, 1:2] - mean * scale
        ss_ref[:, 0:1] = scale
        ss_ref[:, 1:2] = shift


def _affine_kernel(conv_ref, ss_ref, o_ref):
    # conv_ref: [Cout, tile_s], ss_ref: [Cout, 2] (scale, shift), o_ref: [Cout, tile_s]
    o_ref[...] = conv_ref[...] * ss_ref[:, 0:1] + ss_ref[:, 1:2]


def conv_bn_forward(x, w, conv_bias, gamma, beta, *, padding=1, eps=1e-5,
                    tile_s_target=2048):
    """ConvBN forward.  x: [N, Cin, D, H, W] (NCDHW), w: [Cout, Cin, kD, kH, kW].

    conv_bias is accepted for API parity with the PyTorch module but NOT
    applied: a per-channel constant shift is cancelled exactly by the
    training-mode BatchNorm mean subtraction and leaves the variance unchanged.
    """
    del conv_bias  # cancelled exactly by BN (see docstring)
    # TODO(synk): running-stat (eval-mode) BN and running_mean/var updates are
    # not implemented; this is the training-mode (batch-stats) forward.

    N, Cin, D, H, W = x.shape
    Cout, _, kD, kH, kW = w.shape
    P = padding

    S = D * H * W
    K = Cin * kD * kH * kW

    # ---- glue: transposed im2col aT[n, k, s]; k ordered (kd, kh, kw, ci) -----
    # No transpose of the 1x input or of the 27x patch array is needed: NCDHW
    # already has channels before spatial, so tap slices stack straight into
    # the (k, s) layout the kernel wants.
    x32 = x.astype(jnp.float32)
    xp = jnp.pad(x32, ((0, 0), (0, 0), (P, P), (P, P), (P, P)))
    taps = []
    for kd in range(kD):
        for kh in range(kH):
            for kw_ in range(kW):
                taps.append(xp[:, :, kd:kd + D, kh:kh + H, kw_:kw_ + W])
    at = jnp.stack(taps, axis=1).reshape(N, K, S)               # [N, K, S]

    bt = jnp.transpose(w, (0, 2, 3, 4, 1)).reshape(Cout, K).astype(jnp.float32)
    gb = jnp.stack([gamma.astype(jnp.float32),
                    beta.astype(jnp.float32)], axis=1)          # [Cout, 2]

    # ---- tiling: lanes = spatial (multiple of 128), sublanes = K / Cout ------
    Kp = _round_up(K, 8)
    nt = max(1, -(-S // tile_s_target))          # number of spatial tiles
    tile_s = _round_up(-(-S // nt), 128)         # lane-dense tile width
    Sp = nt * tile_s

    at = jnp.pad(at, ((0, 0), (0, Kp - K), (0, Sp - S)))        # [N, Kp, Sp]
    bt = jnp.pad(bt, ((0, 0), (0, Kp - K)))                     # [Cout, Kp]

    inv_m = 1.0 / (N * S)   # zero-padded spatial columns contribute 0 to sums

    # ---- pass 1: conv matmul, store conv, accumulate stats -> (scale, shift) -
    conv, ss = pl.pallas_call(
        functools.partial(_conv_stats_kernel, eps=eps, inv_m=inv_m),
        out_shape=(jax.ShapeDtypeStruct((N, Cout, Sp), jnp.float32),
                   jax.ShapeDtypeStruct((Cout, 2), jnp.float32)),
        grid=(N, nt),
        in_specs=[
            pl.BlockSpec((None, Kp, tile_s), lambda n, t: (n, 0, t)),
            pl.BlockSpec((Cout, Kp), lambda n, t: (0, 0)),
            pl.BlockSpec((Cout, 2), lambda n, t: (0, 0)),
        ],
        out_specs=(
            pl.BlockSpec((None, Cout, tile_s), lambda n, t: (n, 0, t)),
            pl.BlockSpec((Cout, 2), lambda n, t: (0, 0)),
        ),
        compiler_params=pltpu.CompilerParams(
            dimension_semantics=("arbitrary", "arbitrary")),
    )(at, bt, gb)

    # ---- pass 2: per-channel affine on the stored conv (megacore-parallel) ---
    out = pl.pallas_call(
        _affine_kernel,
        out_shape=jax.ShapeDtypeStruct((N, Cout, Sp), jnp.float32),
        grid=(N, nt),
        in_specs=[
            pl.BlockSpec((None, Cout, tile_s), lambda n, t: (n, 0, t)),
            pl.BlockSpec((Cout, 2), lambda n, t: (0, 0)),
        ],
        out_specs=pl.BlockSpec((None, Cout, tile_s), lambda n, t: (n, 0, t)),
        compiler_params=pltpu.CompilerParams(
            dimension_semantics=("parallel", "parallel")),
    )(conv, ss)

    # ---- glue: strip spatial padding; already channel-major -> pure reshape --
    return out[:, :, :S].reshape(N, Cout, D, H, W)


def _reference(x, w, conv_bias, gamma, beta, *, padding=1, eps=1e-5):
    conv = jax.lax.conv_general_dilated(
        x, w, window_strides=(1, 1, 1),
        padding=((padding,) * 2,) * 3,
        dimension_numbers=("NCDHW", "OIDHW", "NCDHW"))
    conv = conv + conv_bias[None, :, None, None, None]
    mean = conv.mean(axis=(0, 2, 3, 4), keepdims=True)
    var = ((conv - mean) ** 2).mean(axis=(0, 2, 3, 4), keepdims=True)
    return ((conv - mean) / jnp.sqrt(var + eps)
            * gamma[None, :, None, None, None]
            + beta[None, :, None, None, None])


if __name__ == "__main__":
    # Small shapes consistent with ConvBN(Conv3d(4, 8, 3, padding=1)):
    N, Cin, D, H, W = 2, 4, 8, 8, 8
    Cout, kD, kH, kW = 8, 3, 3, 3

    key = jax.random.PRNGKey(0)
    kx, kw, kb = jax.random.split(key, 3)
    x = jax.random.normal(kx, (N, Cin, D, H, W), dtype=jnp.float32)
    w = jax.random.normal(kw, (Cout, Cin, kD, kH, kW), dtype=jnp.float32) * 0.1
    conv_bias = jax.random.normal(kb, (Cout,), dtype=jnp.float32) * 0.1
    # BatchNorm3d default init: weight (gamma) = 1, bias (beta) = 0
    gamma = jnp.ones((Cout,), dtype=jnp.float32)
    beta = jnp.zeros((Cout,), dtype=jnp.float32)

    y = conv_bn_forward(x, w, conv_bias, gamma, beta)
    y = jax.block_until_ready(y)

    y_ref = _reference(x, w, conv_bias, gamma, beta)
    assert y.shape == (N, Cout, D, H, W)
    assert jnp.allclose(y, y_ref, atol=2e-3, rtol=2e-3), "mismatch vs reference"

    print("KERNEL_OK")
</pallas_src>

<mosaic_0001>
module attributes {stable_mosaic.version = 11 : i64} {
  func.func @_conv_stats_kernel(%arg0: i32, %arg1: i32, %arg2: memref<1x112x512xf32, #tpu.memory_space<vmem>>, %arg3: memref<8x112xf32, #tpu.memory_space<vmem>>, %arg4: memref<8x2xf32, #tpu.memory_space<vmem>>, %arg5: memref<1x8x512xf32, #tpu.memory_space<vmem>>, %arg6: memref<8x2xf32, #tpu.memory_space<vmem>>) attributes {dimension_semantics = [#tpu.dimension_semantics<arbitrary>, #tpu.dimension_semantics<arbitrary>], iteration_bounds = array<i64: 2, 1>, scalar_prefetch = 0 : i64, scratch_operands = 0 : i64, tpu.core_type = #tpu.core_type<tc>, window_params = [{transform_indices = @transform_0, window_bounds = array<i64: 1, 112, 512>}, {pipeline_mode = #tpu.pipeline_mode<synchronous>, transform_indices = @transform_1, window_bounds = array<i64: 8, 112>}, {pipeline_mode = #tpu.pipeline_mode<synchronous>, transform_indices = @transform_2, window_bounds = array<i64: 8, 2>}, {transform_indices = @transform_3, window_bounds = array<i64: 1, 8, 512>}, {pipeline_mode = #tpu.pipeline_mode<synchronous>, transform_indices = @transform_4, window_bounds = array<i64: 8, 2>}]} {
    %c0_i32 = arith.constant 0 : i32
    %0 = arith.cmpi eq, %arg0, %c0_i32 : i32
    %c0_i32_0 = arith.constant 0 : i32
    %1 = arith.cmpi eq, %arg1, %c0_i32_0 : i32
    %2 = arith.andi %0, %1 : i1
    %c1_i32 = arith.constant 1 : i32
    %3 = arith.cmpi eq, %arg0, %c1_i32 : i32
    %c0_i32_1 = arith.constant 0 : i32
    %4 = arith.cmpi eq, %arg1, %c0_i32_1 : i32
    %5 = arith.andi %3, %4 : i1
    %6 = arith.extui %2 : i1 to i32
    %c0_i32_2 = arith.constant 0 : i32
    %7 = arith.cmpi ne, %6, %c0_i32_2 : i32
    scf.if %7 {
      %cst_20 = arith.constant 0.000000e+00 : f32
      %28 = vector.broadcast %cst_20 : f32 to vector<8x2xf32>
      %c0_21 = arith.constant 0 : index
      %c0_22 = arith.constant 0 : index
      %29 = vector.load %arg6[%c0_21, %c0_22] : memref<8x2xf32, #tpu.memory_space<vmem>>, vector<8x2xf32>
      tpu.vector_store %arg6[%c0_21, %c0_22], %28 {strides = array<i32>} : memref<8x2xf32, #tpu.memory_space<vmem>>, vector<8x2xf32>,
    } else {
    }
    %c0 = arith.constant 0 : index
    %c0_3 = arith.constant 0 : index
    %8 = vector.load %arg3[%c0, %c0_3] : memref<8x112xf32, #tpu.memory_space<vmem>>, vector<8x112xf32>
    %c0_4 = arith.constant 0 : index
    %c0_5 = arith.constant 0 : index
    %c0_6 = arith.constant 0 : index
    %9 = vector.load %arg2[%c0_4, %c0_5, %c0_6] : memref<1x112x512xf32, #tpu.memory_space<vmem>>, vector<1x112x512xf32>
    %10 = vector.shape_cast %9 : vector<1x112x512xf32> to vector<112x512xf32>
    %cst = arith.constant dense<0.000000e+00> : vector<8x512xf32>
    %11 = tpu.matmul %8, %10, %cst {dimension_numbers = #tpu.dot_dimension_numbers<[1], [0], [0], [1], [0, 0, 1, 1], [], []>} : vector<8x112xf32>, vector<112x512xf32>, vector<8x512xf32> -> vector<8x512xf32>
    %c0_7 = arith.constant 0 : index
    %c0_8 = arith.constant 0 : index
    %c0_9 = arith.constant 0 : index
    %12 = vector.load %arg5[%c0_7, %c0_8, %c0_9] : memref<1x8x512xf32, #tpu.memory_space<vmem>>, vector<1x8x512xf32>
    %13 = vector.shape_cast %12 : vector<1x8x512xf32> to vector<8x512xf32>
    %14 = vector.shape_cast %11 : vector<8x512xf32> to vector<1x8x512xf32>
    tpu.vector_store %arg5[%c0_7, %c0_8, %c0_9], %14 {strides = array<i32>} : memref<1x8x512xf32, #tpu.memory_space<vmem>>, vector<1x8x512xf32>,
    %c0_10 = arith.constant 0 : index
    %c0_11 = arith.constant 0 : index
    %15 = vector.load %arg6[%c0_10, %c0_11] : memref<8x2xf32, #tpu.memory_space<vmem>>, vector<8x1xf32>
    %cst_12 = arith.constant dense<0.000000e+00> : vector<8xf32>
    %16 = vector.multi_reduction <add>, %11, %cst_12 [1] : vector<8x512xf32> to vector<8xf32>
    %17 = vector.shape_cast %16 : vector<8xf32> to vector<8x1xf32>
    %18 = arith.addf %15, %17 : vector<8x1xf32>
    %c0_13 = arith.constant 0 : index
    %c0_14 = arith.constant 0 : index
    %19 = vector.load %arg6[%c0_13, %c0_14] : memref<8x2xf32, #tpu.memory_space<vmem>>, vector<8x1xf32>
    tpu.vector_store %arg6[%c0_13, %c0_14], %18 {strides = array<i32>} : memref<8x2xf32, #tpu.memory_space<vmem>>, vector<8x1xf32>,
    %c0_15 = arith.constant 0 : index
    %c1 = arith.constant 1 : index
    %20 = vector.load %arg6[%c0_15, %c1] : memref<8x2xf32, #tpu.memory_space<vmem>>, vector<8x1xf32>
    %21 = arith.mulf %11, %11 : vector<8x512xf32>
    %cst_16 = arith.constant dense<0.000000e+00> : vector<8xf32>
    %22 = vector.multi_reduction <add>, %21, %cst_16 [1] : vector<8x512xf32> to vector<8xf32>
    %23 = vector.shape_cast %22 : vector<8xf32> to vector<8x1xf32>
    %24 = arith.addf %20, %23 : vector<8x1xf32>
    %c0_17 = arith.constant 0 : index
    %c1_18 = arith.constant 1 : index
    %25 = vector.load %arg6[%c0_17, %c1_18] : memref<8x2xf32, #tpu.memory_space<vmem>>, vector<8x1xf32>
    tpu.vector_store %arg6[%c0_17, %c1_18], %24 {strides = array<i32>} : memref<8x2xf32, #tpu.memory_space<vmem>>, vector<8x1xf32>,
    %26 = arith.extui %5 : i1 to i32
    %c0_i32_19 = arith.constant 0 : i32
    %27 = arith.cmpi ne, %26, %c0_i32_19 : i32
    scf.if %27 {
      %c0_20 = arith.constant 0 : index
      %c0_21 = arith.constant 0 : index
      %28 = vector.load %arg6[%c0_20, %c0_21] : memref<8x2xf32, #tpu.memory_space<vmem>>, vector<8x1xf32>
      %cst_22 = arith.constant 9.765625E-4 : f32
      %29 = vector.broadcast %cst_22 : f32 to vector<8x1xf32>
      %30 = arith.mulf %28, %29 : vector<8x1xf32>
      %c0_23 = arith.constant 0 : index
      %c1_24 = arith.constant 1 : index
      %31 = vector.load %arg6[%c0_23, %c1_24] : memref<8x2xf32, #tpu.memory_space<vmem>>, vector<8x1xf32>
      %cst_25 = arith.constant 9.765625E-4 : f32
      %32 = vector.broadcast %cst_25 : f32 to vector<8x1xf32>
      %33 = arith.mulf %31, %32 : vector<8x1xf32>
      %34 = arith.mulf %30, %30 : vector<8x1xf32>
      %35 = arith.subf %33, %34 : vector<8x1xf32>
      %cst_26 = arith.constant 0.000000e+00 : f32
      %36 = vector.broadcast %cst_26 : f32 to vector<8x1xf32>
      %37 = arith.maximumf %35, %36 : vector<8x1xf32>
      %cst_27 = arith.constant 9.99999974E-6 : f32
      %38 = vector.broadcast %cst_27 : f32 to vector<8x1xf32>
      %39 = arith.addf %37, %38 : vector<8x1xf32>
      %40 = math.rsqrt %39 : vector<8x1xf32>
      %c0_28 = arith.constant 0 : index
      %c0_29 = arith.constant 0 : index
      %41 = vector.load %arg4[%c0_28, %c0_29] : memref<8x2xf32, #tpu.memory_space<vmem>>, vector<8x1xf32>
      %42 = arith.mulf %40, %41 : vector<8x1xf32>
      %c0_30 = arith.constant 0 : index
      %c1_31 = arith.constant 1 : index
      %43 = vector.load %arg4[%c0_30, %c1_31] : memref<8x2xf32, #tpu.memory_space<vmem>>, vector<8x1xf32>
      %44 = arith.mulf %30, %42 : vector<8x1xf32>
      %45 = arith.subf %43, %44 : vector<8x1xf32>
      %c0_32 = arith.constant 0 : index
      %c0_33 = arith.constant 0 : index
      %46 = vector.load %arg6[%c0_32, %c0_33] : memref<8x2xf32, #tpu.memory_space<vmem>>, vector<8x1xf32>
      tpu.vector_store %arg6[%c0_32, %c0_33], %42 {strides = array<i32>} : memref<8x2xf32, #tpu.memory_space<vmem>>, vector<8x1xf32>,
      %c0_34 = arith.constant 0 : index
      %c1_35 = arith.constant 1 : index
      %47 = vector.load %arg6[%c0_34, %c1_35] : memref<8x2xf32, #tpu.memory_space<vmem>>, vector<8x1xf32>
      tpu.vector_store %arg6[%c0_34, %c1_35], %45 {strides = array<i32>} : memref<8x2xf32, #tpu.memory_space<vmem>>, vector<8x1xf32>,
    } else {
    }
    return
  }
  func.func @transform_0(%arg0: i32, %arg1: i32) -> (i32, i32, i32) {
    %c0_i32 = arith.constant 0 : i32
    %c0_i32_0 = arith.constant 0 : i32
    return %arg0, %c0_i32, %arg1 : i32, i32, i32
  }
  func.func @transform_1(%arg0: i32, %arg1: i32) -> (i32, i32) {
    %c0_i32 = arith.constant 0 : i32
    %c0_i32_0 = arith.constant 0 : i32
    %c0_i32_1 = arith.constant 0 : i32
    return %c0_i32, %c0_i32_0 : i32, i32
  }
  func.func @transform_2(%arg0: i32, %arg1: i32) -> (i32, i32) {
    %c0_i32 = arith.constant 0 : i32
    %c0_i32_0 = arith.constant 0 : i32
    %c0_i32_1 = arith.constant 0 : i32
    return %c0_i32, %c0_i32_0 : i32, i32
  }
  func.func @transform_3(%arg0: i32, %arg1: i32) -> (i32, i32, i32) {
    %c0_i32 = arith.constant 0 : i32
    %c0_i32_0 = arith.constant 0 : i32
    return %arg0, %c0_i32, %arg1 : i32, i32, i32
  }
  func.func @transform_4(%arg0: i32, %arg1: i32) -> (i32, i32) {
    %c0_i32 = arith.constant 0 : i32
    %c0_i32_0 = arith.constant 0 : i32
    %c0_i32_1 = arith.constant 0 : i32
    return %c0_i32, %c0_i32_0 : i32, i32
  }
}

</mosaic_0001>

<bundles_post_ra>
// kernel: tpu_custom_call.1
= control target key start
LH: loop header
LB: loop body
LE: loop exit
PB: predicated region body
PF: predicated region fallthrough
CT: control target
= control target key end

     0   :  { %10 = vsyncpa [#allocation3], 0  ;;  %s1178_s0 = inlined_call_operand.hbm [shape: f32[2,112,512], index: 0, kind: input, shape index: {}]   ;;  %s1179_s1 = inlined_call_operand.vmem [shape: f32[8,112], index: 1, kind: input, shape index: {}]   ;;  %s1180_s2 = inlined_call_operand.vmem [shape: f32[8,2], index: 2, kind: input, shape index: {}]   ;;  %s1181_s3 = inlined_call_operand.hbm [shape: f32[2,8,512], index: 3, kind: output, shape index: {0}]   ;;  %s1182_s4 = inlined_call_operand.vmem [shape: f32[8,2], index: 4, kind: output, shape index: {1}]  }
   0x1   :  { %12 = vsyncpa [#allocation3 + $0x1], 0 }
   0x2   :  { %13 = vsyncpa [#allocation4], 0 }
   0x3   :  { %15 = vsyncpa [#allocation4 + $0x1], 0  ;;  %s907_s15 = smov 0   ;;  %s909_s16 = smov 0  }
   0x4   :  { %s911_s17 = smov 0   ;;  %s913_s18 = smov 0  }
   0x5   :  { %s915_s19 = smov 0   ;;  %s917_s20 = smov 0  }
   0x6 LB: > { %s612_s21 = sadd.s32 4294967295, %s872_s20   ;;  %s613_s22 = sadd.s32 4294967294, %s872_s20   ;;  %s872_s20 = sphi %s917_s20, %s21_s20   ;;  %s868_s19 = sphi %s915_s19, %s1197_s19   ;;  %s864_s18 = sphi %s913_s18, %s1196_s18   ;;  %s860_s17 = sphi %s911_s17, %s1195_s17   ;;  %s856_s16 = sphi %s909_s16, %s1194_s16   ;;  %s852_s15 = sphi %s907_s15, %s1193_s15  }
   0x7   : > { %s33_s23 = sadd.s32 1, %s868_s19  ;;  %s42_s24 = sadd.s32 1, %s860_s17 }
   0x8   : > { %p35_p0 = scmp.ge.s32.totalorder %s33_s23, 2  ;;  %p49_p1 = scmp.ne.s32.totalorder %s860_s17, %s856_s16 }
   0x9   : > { %p50_p2 = scmp.eq.s32.totalorder %s872_s20, 0  ;;  %p55_p3 = scmp.ne.s32.totalorder %s856_s16, %s852_s15 }
   0xa   : > { %s1199_s23 = smov (%p35_p0, %s33_s23), 0  ;;  %p56_p5 = scmp.eq.s32.totalorder %s612_s21, 0 }
   0xb   : > { %p948_p4 = por %p50_p2, %p49_p1  ;;  %s37_s26 = ssub.s32 %s868_s19, %s1199_s23 }
   0xc   : > { %p123_p6 = scmp.eq.s32.totalorder %s612_s21, 1  ;;  %p40_p7 = scmp.eq.s32.totalorder %s37_s26, 0 }
   0xd   : > { %p954_p8 = por %p56_p5, %p55_p3  ;;  %p129_p10 = scmp.eq.s32.totalorder %s613_s22, 1 }
   0xe   : > { %p958_p9 = por %p123_p6, %p49_p1  ;;  %p702_p13 = scmp.lt.s32.totalorder %s872_s20, 2 }
   0xf   : > { %s963_s29 = scalar_select %p40_p7, %s860_s17, %s42_s24  }
  0x10   : > { %s1186_s28 = scalar_select %p958_p9, 1, 0 }
  0x11   : > { %p965_p11 = por %p129_p10, %p55_p3  ;;  %s176_s5 = sand.u32 1, %s860_s17  }
  0x12   : > { %s687_s6 = smul.u32 448, %s176_s5  ;;  %p975_p0 = pnand %p702_p13, %p948_p4 }
  0x13   : > { %s1187_s30 = scalar_select %p965_p11, 1, 0 }
  0x14   : > { %s688_s7 = smul.u32 7168, %s868_s19  ;;  %s180_s12 = scalar_lea.vmem [#allocation2], %s687_s6 }
  0x15   : > { %s189_s13 = sshll.u32 %s180_s12, 4  ;;  %s987_s14 = scalar_lea.sflag [#allocation3], %s176_s5  ;;  %s984_s13 = int_to_ptr.vmem [resolvable:$true] %s189_s13 }
  0x16   : > { %s982_s11 = scalar_lea.hbm %s1178_s0, %s688_s7  ;;  %p762_p3 = pneg %p975_p0 }
  0x17   : > { %s760_s21 = scalar_lea.hbm %s982_s11, 7168  ;;  %s765_s25 = scalar_lea.hbm %s1178_s0, 14336 }
  0x18   : > { %p761_p2 = scmp.ne.s32.totalorder %s982_s11, %s760_s21  ;;  %p766_p6 = scmp.lt.u32.totalorder %s982_s11, %s1178_s0 }
  0x19   : > { %p767_p7 = scmp.lt.u32.totalorder %s765_s25, %s760_s21  ;;  %p769_p13 = scmp.lt.u32.totalorder %s760_s21, %s982_s11 }
  0x1a   : > { %p763_p4 = pnand %p762_p3, %p761_p2 }
  0x1b   : > { %p768_p10 = por %p767_p7, %p766_p6 }
  0x1c   : > { %p764_p5 = pneg %p763_p4 }
  0x1d   : > { %p770_p12 = por %p769_p13, %p768_p10 }
  0x1f   : > { %p771_p1 = pnand %p770_p12, %p764_p5 }
  0x21   : > { %774 = shalt.err (!%p771_p1)
}
  0x22   : > { %s775_s5 = scalar_lea.vmem %s984_s13, 7168  ;;  %s874_s7 = smov [#allocation2]  }
  0x23   : > { %p776_p2 = scmp.ne.s32.totalorder %s984_s13, %s775_s5  ;;  %s780_s9 = sshll.u32 %s874_s7, 4  ;;  %s781_s9 = int_to_ptr.vmem [resolvable:$false] %s780_s9 }
  0x24   : > { %s782_s10 = scalar_lea.vmem %s781_s9, 14336  ;;  %p783_p9 = scmp.lt.s32.totalorder %s984_s13, %s781_s9 }
  0x25   : > { %p778_p4 = pnand %p776_p2, %p762_p3  ;;  %p784_p6 = scmp.lt.s32.totalorder %s782_s10, %s775_s5 }
  0x27   : > { %p779_p11 = pneg %p778_p4  ;;  %p785_p7 = por %p784_p6, %p783_p9 }
  0x29   : > { %p786_p10 = pnand %p785_p7, %p779_p11 }
  0x2b   : > { %789 = shalt.err (!%p786_p10)
}
  0x2c   : > { %s875_s12 = smov 512   ;;  %s876_s21 = smov 32  }
  0x2d   : > { %697 = dma.hbm_to_vmem [thread:$0]  (!%p975_p0), %s982_s11, 7168, %s984_s13, %s987_s14, %s875_s12, %s875_s12, %s876_s21  }
  0x2e   : > { %p197_p12 = scmp.lt.s32.totalorder %s872_s20, 3  ;;  %p1189_p1 = scmp.ge.s32.totalorder %s872_s20, 1 }
  0x30   : > { %p198_p3 = pnand %p1189_p1, %p197_p12 }
  0x31   : > { %s1019_s22 = sand.u32 (!%p198_p3), 1, %s856_s16  }
  0x32   : > { %201 = sbr.rel (%p198_p3) target bundleno = 878 (0x36e), region = 32  ;;  %s204_s25 = scalar_lea.sflag (!%p198_p3), [#allocation3], %s1019_s22 }
  0x33   : > { %s689_s24 = smul.u32 (!%p198_p3), 448, %s1019_s22 }
  0x35   : > { %s1023_s26 = scalar_lea.vmem (!%p198_p3), [#allocation2], %s689_s24 }
  0x39   : > { %843 = dma.done.wait (%p954_p8), %s204_s25, 7168  }
  0x3a   : > { %845 = vsyncadd (%p954_p8), %s204_s25, 4294960128  ;;  %s618_s8 = sshll.u32 %s1019_s22, 5  ;;  %p234_p9 = scmp.eq.s32.totalorder %s864_s18, 0 }
  0x3b   : > { %p238_p11 = scmp.eq.s32.totalorder %s864_s18, 1  ;;  %s1032_s11 = scalar_lea.vmem [#allocation5], %s618_s8  ;;  %vm243_vm0 = vcmask (%p234_p9), 15360   ;;  %v877_v0 = vmov (%p234_p9), 0.0  }
  0x3c   : > { %242 = sbr.rel (!%p234_p9) target bundleno = 67 (0x43), region = 40  ;;  %244 = vst.msk [vmem:[%s1182_s4] sm:$0xff] (%p234_p9), %vm243_vm0, %v877_v0 }
  0x43 PF: > { %v247_v1 = vld [vmem:[%s1023_s26 + $0x8] sm:$0xff]  ;;  %v246_v3 = vld [vmem:[%s1023_s26] sm:$0xff]  ;;  %v249_v6 = vld [vmem:[%s1023_s26 + $0x18] sm:$0xff]  ;;  %v878_v8 = vmov 0.0   ;;  %vm302_vm1 = vcmask 916480   ;;  %vm459_vm2 = vcmask 7168  }
  0x44   : > { %v251_v2 = vld [vmem:[%s1023_s26 + $0x28] sm:$0xff]  ;;  %v250_v5 = vld [vmem:[%s1023_s26 + $0x20] sm:$0xff]  ;;  %v253_v7 = vld [vmem:[%s1023_s26 + $0x38] sm:$0xff]  ;;  %370 = vmatprep.mubr.f32.mxu0 %v878_v8  ;;  %441 = vmatprep.mubr.f32.mxu1 %v878_v8  ;;  %vm472_vm3 = vcmask 15368   ;;  %s879_s13 = smov (%p238_p11), 1   ;;  %s880_s6 = smov (%p238_p11), 127  }
  0x45   : > { %v631_v4 = vpack.c.bf16 %v251_v2, %v247_v1  ;;  %v633_v9 = vpack.c.bf16 %v250_v5, %v246_v3  ;;  %v659_v10 = vpack.c.bf16 %v253_v7, %v249_v6  ;;  %v248_v11 = vld [vmem:[%s1023_s26 + $0x10] sm:$0xff]  ;;  %v255_v13 = vld [vmem:[%s1023_s26 + $0x48] sm:$0xff]  ;;  %v254_v16 = vld [vmem:[%s1023_s26 + $0x40] sm:$0xff] }
  0x46   : > { %v252_v12 = vld [vmem:[%s1023_s26 + $0x30] sm:$0xff]  ;;  %v259_v15 = vld [vmem:[%s1023_s26 + $0x68] sm:$0xff]  ;;  %v258_v17 = vld [vmem:[%s1023_s26 + $0x60] sm:$0xff] }
  0x47   : > { %632 = vmatprep.subr.bf16.mxu0 %v631_v4  ;;  %v661_v14 = vpack.c.bf16 %v252_v12, %v248_v11  ;;  %660 = vmatprep.subr.bf16.mxu1 %v659_v10  ;;  %v635_v18 = vpack.c.bf16 %v259_v15, %v255_v13  ;;  %v637_v19 = vpack.c.bf16 %v258_v17, %v254_v16  ;;  %v257_v20 = vld [vmem:[%s1023_s26 + $0x58] sm:$0xff]  ;;  %v256_v22 = vld [vmem:[%s1023_s26 + $0x50] sm:$0xff]  ;;  %v263_v25 = vld [vmem:[%s1023_s26 + $0x88] sm:$0xff] }
  0x48   : > { %634 = vmatpush1.bf16.msra.mxu0 %v633_v9  ;;  %v261_v21 = vld [vmem:[%s1023_s26 + $0x78] sm:$0xff]  ;;  %v260_v24 = vld [vmem:[%s1023_s26 + $0x70] sm:$0xff]  ;;  %v267_v26 = vld [vmem:[%s1023_s26 + $0xa8] sm:$0xff] }
  0x49   : > { %662 = vmatpush1.bf16.msra.mxu1 %v661_v14  ;;  %v663_v23 = vpack.c.bf16 %v261_v21, %v257_v20  ;;  %636 = vmatprep.subr.bf16.mxu0 %v635_v18  ;;  %v665_v27 = vpack.c.bf16 %v260_v24, %v256_v22  ;;  %v639_v28 = vpack.c.bf16 %v267_v26, %v263_v25  ;;  %v262_v29 = vld [vmem:[%s1023_s26 + $0x80] sm:$0xff]  ;;  %v265_v31 = vld [vmem:[%s1023_s26 + $0x98] sm:$0xff]  ;;  %v264_v33 = vld [vmem:[%s1023_s26 + $0x90] sm:$0xff] }
  0x4a   : > { %v266_v30 = vld [vmem:[%s1023_s26 + $0xa0] sm:$0xff]  ;;  %v269_v32 = vld [vmem:[%s1023_s26 + $0xb8] sm:$0xff]  ;;  %v268_v34 = vld [vmem:[%s1023_s26 + $0xb0] sm:$0xff] }
  0x4b   : > { %664 = vmatprep.subr.bf16.mxu1 %v663_v23  ;;  %v641_v35 = vpack.c.bf16 %v266_v30, %v262_v29  ;;  %v667_v36 = vpack.c.bf16 %v269_v32, %v265_v31  ;;  %v271_v37 = vld [vmem:[%s1023_s26 + $0xc8] sm:$0xff]  ;;  %v270_v39 = vld [vmem:[%s1023_s26 + $0xc0] sm:$0xff]  ;;  %v669_v40 = vpack.c.bf16 %v268_v34, %v264_v33  ;;  %v273_v43 = vld [vmem:[%s1023_s26 + $0xd8] sm:$0xff] }
  0x4c   : > { %638 = vmatpush1.bf16.msra.mxu0 %v637_v19  ;;  %v275_v38 = vld [vmem:[%s1023_s26 + $0xe8] sm:$0xff]  ;;  %v274_v42 = vld [vmem:[%s1023_s26 + $0xe0] sm:$0xff]  ;;  %v277_v44 = vld [vmem:[%s1023_s26 + $0xf8] sm:$0xff] }
  0x4d   : > { %666 = vmatpush1.bf16.msra.mxu1 %v665_v27  ;;  %640 = vmatprep.subr.bf16.mxu0 %v639_v28  ;;  %v643_v41 = vpack.c.bf16 %v275_v38, %v271_v37  ;;  %v671_v45 = vpack.c.bf16 %v277_v44, %v273_v43  ;;  %v272_v46 = vld [vmem:[%s1023_s26 + $0xd0] sm:$0xff]  ;;  %v279_v48 = vld [vmem:[%s1023_s26 + $0x108] sm:$0xff]  ;;  %v645_v50 = vpack.c.bf16 %v274_v42, %v270_v39  ;;  %v281_v51 = vld [vmem:[%s1023_s26 + $0x118] sm:$0xff] }
  0x4e   : > { %668 = vmatprep.subr.bf16.mxu1 %v667_v36  ;;  %v276_v47 = vld [vmem:[%s1023_s26 + $0xf0] sm:$0xff]  ;;  %v283_v49 = vld [vmem:[%s1023_s26 + $0x128] sm:$0xff]  ;;  %v285_v52 = vld [vmem:[%s1023_s26 + $0x138] sm:$0xff] }
  0x4f   : > { %v673_v53 = vpack.c.bf16 %v276_v47, %v272_v46  ;;  %v647_v54 = vpack.c.bf16 %v283_v49, %v279_v48  ;;  %v278_v55 = vld [vmem:[%s1023_s26 + $0x100] sm:$0xff]  ;;  %v280_v57 = vld [vmem:[%s1023_s26 + $0x110] sm:$0xff]  ;;  %v675_v58 = vpack.c.bf16 %v285_v52, %v281_v51  ;;  %v287_v60 = vld [vmem:[%s1023_s26 + $0x148] sm:$0xff] }
  0x50   : > { %642 = vmatpush1.bf16.msra.mxu0 %v641_v35  ;;  %v282_v56 = vld [vmem:[%s1023_s26 + $0x120] sm:$0xff]  ;;  %v284_v59 = vld [vmem:[%s1023_s26 + $0x130] sm:$0xff]  ;;  %v291_v61 = vld [vmem:[%s1023_s26 + $0x168] sm:$0xff] }
  0x51   : > { %670 = vmatpush1.bf16.msra.mxu1 %v669_v40  ;;  %644 = vmatprep.subr.bf16.mxu0 %v643_v41  ;;  %v289_v62 = vld [vmem:[%s1023_s26 + $0x158] sm:$0xff]  ;;  %v649_v0 = vpack.c.bf16 %v282_v56, %v278_v55  ;;  %v677_v1 = vpack.c.bf16 %v284_v59, %v280_v57  ;;  %v651_v2 = vpack.c.bf16 %v291_v61, %v287_v60  ;;  %v286_v3 = vld [vmem:[%s1023_s26 + $0x140] sm:$0xff]  ;;  %v288_v5 = vld [vmem:[%s1023_s26 + $0x150] sm:$0xff] }
  0x52   : > { %672 = vmatprep.subr.bf16.mxu1 %v671_v45  ;;  %v293_v63 = vld [vmem:[%s1023_s26 + $0x178] sm:$0xff]  ;;  %v290_v4 = vld [vmem:[%s1023_s26 + $0x160] sm:$0xff]  ;;  %v292_v7 = vld [vmem:[%s1023_s26 + $0x170] sm:$0xff] }
  0x53   : > { %v679_v6 = vpack.c.bf16 %v293_v63, %v289_v62  ;;  %v295_v8 = vld [vmem:[%s1023_s26 + $0x188] sm:$0xff]  ;;  %v297_v10 = vld [vmem:[%s1023_s26 + $0x198] sm:$0xff]  ;;  %v653_v12 = vpack.c.bf16 %v290_v4, %v286_v3  ;;  %v681_v13 = vpack.c.bf16 %v292_v7, %v288_v5  ;;  %v294_v15 = vld [vmem:[%s1023_s26 + $0x180] sm:$0xff] }
  0x54   : > { %646 = vmatpush1.bf16.msra.mxu0 %v645_v50  ;;  %v299_v9 = vld [vmem:[%s1023_s26 + $0x1a8] sm:$0xff]  ;;  %v301_v11 = vld [vmem:[%s1023_s26 + $0x1b8] sm:$0xff]  ;;  %v298_v16 = vld [vmem:[%s1023_s26 + $0x1a0] sm:$0xff] }
  0x55   : > { %674 = vmatpush1.bf16.msra.mxu1 %v673_v53  ;;  %648 = vmatprep.subr.bf16.mxu0 %v647_v54  ;;  %v655_v14 = vpack.c.bf16 %v299_v9, %v295_v8  ;;  %v683_v17 = vpack.c.bf16 %v301_v11, %v297_v10  ;;  %v296_v18 = vld [vmem:[%s1023_s26 + $0x190] sm:$0xff]  ;;  %v657_v20 = vpack.c.bf16 %v298_v16, %v294_v15  ;;  %v245_v22 = vld [vmem:[%s1179_s1] sm:$0xff] }
  0x56   : > { %676 = vmatprep.subr.bf16.mxu1 %v675_v58  ;;  %v300_v19 = vld [vmem:[%s1023_s26 + $0x1b0] sm:$0xff]  ;;  %v452_v37 = vld [vmem:[%s1182_s4] sm:$0xff] }
  0x57   : > { %v685_v21 = vpack.c.bf16 %v300_v19, %v296_v18  ;;  %v487_v46 = vld [vmem:[%s1180_s2] sm:$0xff] (%p238_p11) }
  0x58   : > { %650 = vmatpush1.bf16.msra.mxu0 %v649_v0 }
  0x59   : > { %678 = vmatpush1.bf16.msra.mxu1 %v677_v1  ;;  %652 = vmatprep.subr.bf16.mxu0 %v651_v2 }
  0x5a   : > { %680 = vmatprep.subr.bf16.mxu1 %v679_v6 }
  0x5c   : > { %654 = vmatpush1.bf16.msra.mxu0 %v653_v12 }
  0x5d   : > { %682 = vmatpush1.bf16.msra.mxu1 %v681_v13  ;;  %656 = vmatprep.subr.bf16.mxu0 %v655_v14 }
  0x5e   : > { %684 = vmatprep.subr.bf16.mxu1 %v683_v17 }
  0x60   : > { %658 = vmatpush1.bf16.msra.mxu0 %v657_v20 }
  0x61   : > { %686 = vmatpush1.bf16.msra.mxu1 %v685_v21 }
  0x63   : > { %621 = vmatmul.mubr.msk.f32.vlgmr.msra.gmra.mrb[0].mxu0 %vm302_vm1, %v245_v22 }
  0x64   : > { %622 = vmatmul.mubr.msk.f32.vlgmr.msra.gmra.mrb[0].mxu1 %vm302_vm1, %v245_v22 }
 0x136   : > { %v372_v23 = vpop.f32.mrb[0].mxu0 }
 0x137   : > { %448 = vst [vmem:[%s1032_s11] sm:$0xff] %v372_v23  ;;  %v462_v24 = vmul.f32 %v372_v23, %v372_v23  ;;  %v374_v25 = vpop.f32.mrb[1].mxu0  ;;  %v443_v26 = vpop.f32.mrb[0].mxu1 }
 0x138   : > { %449 = vst [vmem:[%s1032_s11 + $0x8] sm:$0xff] %v374_v25  ;;  %v453_v27 = vadd.f32 %v374_v25, %v372_v23  ;;  %v463_v28 = vmul.f32 %v374_v25, %v374_v25  ;;  %450 = vst [vmem:[%s1032_s11 + $0x10] sm:$0xff] %v443_v26  ;;  %v464_v29 = vmul.f32 %v443_v26, %v443_v26  ;;  %v445_v30 = vpop.f32.mrb[1].mxu1 }
 0x139   : > { %451 = vst [vmem:[%s1032_s11 + $0x18] sm:$0xff] %v445_v30  ;;  %v465_v33 = vmul.f32 %v445_v30, %v445_v30 }
 0x13a   : > { %v466_v31 = vadd.f32 %v463_v28, %v462_v24  ;;  %v454_v32 = vadd.f32 %v453_v27, %v443_v26 }
 0x13c   : > { %v455_v34 = vadd.f32 %v454_v32, %v445_v30  ;;  %v467_v35 = vadd.f32 %v466_v31, %v464_v29 }
 0x13e   : > { %456 = vadd.xlane.f32.xlu0 %v455_v34  ;;  %v468_v36 = vadd.f32 %v467_v35, %v465_v33 }
 0x142   : > { %469 = vadd.xlane.f32.xlu0 %v468_v36 }
 0x1cb   : > { %v457_v38 = vpop.xlane.xlu0 %456 }
 0x1cc   : > { %v458_v39 = vadd.f32 %v457_v38, %v452_v37 }
 0x1ce   : > { %460 = vst.msk [vmem:[%s1182_s4] sm:$0xff] %vm459_vm2, %v458_v39 }
 0x1cf   : > { %v470_v41 = vpop.xlane.xlu0 %469 }
 0x1d2   : > { %475 = sbr.rel (!%p238_p11) target bundleno = 853 (0x355), region = 44 }
 0x1d5   : > { %v461_v40 = vld [vmem:[%s1182_s4] sm:$0xff] }
 0x1d6   : > { %v471_v42 = vadd.f32 %v470_v41, %v461_v40 }
 0x1d8   : > { %473 = vst.msk [vmem:[%s1182_s4] sm:$0xff] %vm472_vm3, %v471_v42 }
 0x1df   : > { %v476_v43 = vld [vmem:[%s1182_s4] sm:$0xff] }
 0x1e0   : > { %v477_v44 = vmul.f32 0.0009765625, %v476_v43 }
 0x1e2   : > { %v478_v45 = vmul.f32 %v477_v44, %v477_v44 }
 0x1e4   : > { %480 = vrot.lane.b32.xlu0 %v478_v45, %s879_s13 }
 0x1e8   : > { %489 = vrot.lane.b32.xlu0 %v487_v46, %s879_s13 }
 0x256   : > { %v481_v47 = vpop.permute.xlu0 %480 }
 0x257   : > { %v483_v48 = vsub.f32 %v477_v44, %v481_v47 }
 0x259   : > { %v484_v49 = vmax.f32 %v483_v48, 0.0 }
 0x25a   : > { %v490_v51 = vpop.permute.xlu0 %489 }
 0x25b   : > { %v485_v50 = vadd.f32 1e-05, %v484_v49 }
 0x25d   : > { %758 = vrsqrt.f32 %v485_v50 }
 0x267   : > { %v759_v52 = vpop.eup %758 }
 0x268   : > { %v492_v53 = vmul.f32 %v759_v52, %v490_v51 }
 0x26a   : > { %494 = vrot.lane.b32.xlu1 %v492_v53, %s880_s6 }
 0x2dc   : > { %v495_v54 = vpop.permute.xlu1 %494 }
 0x2dd   : > { %v497_v55 = vmul.f32 %v495_v54, %v477_v44  ;;  %503 = vst.msk [vmem:[%s1182_s4] sm:$0xff] %vm459_vm2, %v495_v54 }
 0x2df   : > { %499 = vrot.lane.b32.xlu1 %v497_v55, %s879_s13 }
 0x351   : > { %v500_v56 = vpop.permute.xlu1 %499 }
 0x352   : > { %v502_v57 = vsub.f32 %v487_v46, %v500_v56 }
 0x354   : > { %504 = vst.msk [vmem:[%s1182_s4] sm:$0xff] %vm472_vm3, %v502_v57 }
 0x355 PF: > { %s630_s12 = sshll.u32 %s864_s18, 9  ;;  %s522_s26 = sshll.u32 %s1032_s11, 4  ;;  %s523_s26 = int_to_ptr.vmem [resolvable:$true] %s522_s26 }
 0x356   : > { %s1134_s25 = scalar_lea.hbm %s1181_s3, %s630_s12  ;;  %s506_s8 = scalar_lea.sflag [#allocation4], %s1019_s22 }
 0x357   : > { %s790_s13 = scalar_lea.vmem %s523_s26, 512  ;;  %p1190_p0 = scmp.ne.s32.totalorder %s1186_s28, 0 }
 0x358   : > { %p791_p8 = scmp.ne.s32.totalorder %s523_s26, %s790_s13  ;;  %s881_s14 = smov [#allocation5]  }
 0x359   : > { %s794_s27 = sshll.u32 %s881_s14, 4  ;;  %s795_s27 = int_to_ptr.vmem [resolvable:$false] %s794_s27 }
 0x35a   : > { %p792_p5 = pnand %p791_p8, %p1190_p0  ;;  %s796_s6 = scalar_lea.vmem %s795_s27, 1024 }
 0x35b   : > { %p797_p2 = scmp.lt.s32.totalorder %s523_s26, %s795_s27  ;;  %p798_p4 = scmp.lt.s32.totalorder %s796_s6, %s790_s13 }
 0x35c   : > { %p793_p13 = pneg %p792_p5 }
 0x35d   : > { %p799_p6 = por %p798_p4, %p797_p2 }
 0x35f   : > { %p800_p7 = pnand %p799_p6, %p793_p13 }
 0x361   : > { %803 = shalt.err (!%p800_p7)
}
 0x362   : > { %s804_s18 = scalar_lea.hbm %s1134_s25, 512  ;;  %s808_s5 = scalar_lea.hbm %s1181_s3, 1024 }
 0x363   : > { %p805_p10 = scmp.ne.s32.totalorder %s1134_s25, %s804_s18  ;;  %p809_p3 = scmp.lt.u32.totalorder %s1134_s25, %s1181_s3 }
 0x364   : > { %p810_p9 = scmp.lt.u32.totalorder %s808_s5, %s804_s18  ;;  %p812_p8 = scmp.lt.u32.totalorder %s804_s18, %s1134_s25 }
 0x365   : > { %p806_p12 = pnand %p805_p10, %p1190_p0 }
 0x366   : > { %p811_p11 = por %p810_p9, %p809_p3 }
 0x367   : > { %p807_p1 = pneg %p806_p12 }
 0x368   : > { %p813_p5 = por %p812_p8, %p811_p11 }
 0x36a   : > { %p814_p13 = pnand %p813_p5, %p807_p1 }
 0x36c   : > { %817 = shalt.err (!%p814_p13)
}
 0x36d   : > { %692 = dma.vmem_to_hbm [thread:$0]  (%p1190_p0), %s523_s26, 512, %s1134_s25, %s506_s8  }
 0x36e PF: > { %s540_s10 = sand.u32 1, %s852_s15   ;;  %p1191_p2 = scmp.ne.s32.totalorder %s1187_s30, 0 }
 0x36f   : > { %p1192_p4 = scmp.ge.s32.totalorder %s872_s20, 2  ;;  %s541_s12 = scalar_lea.sflag [#allocation4], %s540_s10 }
 0x371   : > { %p699_p6 = pnand %p1192_p4, %p1191_p2 }
 0x373   : > { %847 = dma.done.wait (!%p699_p6), %s541_s12, 512  }
 0x374   : > { %849 = vsyncadd (!%p699_p6), %s541_s12, 4294966784  ;;  %s21_s20 = sadd.s32 1, %s872_s20   ;;  %s1193_s15 = smov %s856_s16 }
 0x375   : > { %p18_p7 = scmp.ge.s32.totalorder %s21_s20, 4   ;;  %s1194_s16 = smov %s860_s17 }
 0x376   : > { %s1195_s17 = smov %s963_s29  ;;  %s1196_s18 = smov %s868_s19 }
 0x377   : > { %s1197_s19 = smov %s1199_s23  ;;  %20 = sbr.rel (!%p18_p7) target bundleno = 6 (0x6), region = 93 }
 0x37e   :  { %546 = vsyncpa [#allocation3], 1 }
 0x37f   :  { %548 = vsyncpa [#allocation3 + $0x1], 1 }
 0x380   :  { %549 = vsyncpa [#allocation4], 1 }
 0x381   :  { %551 = vsyncpa [#allocation4 + $0x1], 1 }

</bundles_post_ra>
